<compile_context>
chip_gen: v7x
topology: tpu7x:2x2x1
jax: 0.10.0
libtpu: 0.0.40
codegen_flags: <defaults>
</compile_context>

<pallas_src>
import functools

import jax
import jax.numpy as jnp
import numpy as np
from jax.experimental import pallas as pl
from jax.experimental.pallas import tpu as pltpu

EPS = 1e-5


def _down_kernel(x_ref, w1_ref, b1_ref, w2_ref, b2_ref, o_ref,
                 pad1_ref, pad2_ref, *, Hh):
    """One batch element per grid step.

    x_ref  : (1, 4, Hh, Wh*C_in)   bf16, 2x2 pool-window members on axis 1
    w*_ref : (3, Wh*Cin, Wh*Cout)  bf16, width taps + BN scale folded in
    b*_ref : (1, Wh*Cout)          f32,  folded BN bias tiled over W
    o_ref  : (1, Hh, Wh*C_out)     f32
    pad*   : VMEM (Hh+2, Wh*C)     f32,  H-zero-padded activations
    """
    # Zero only the two border rows (interior is fully overwritten each step).
    # Done unconditionally rather than once under pl.when(program_id==0) so it
    # stays correct when the batch axis is sharded across TensorCores.
    zero1 = jnp.zeros((1, pad1_ref.shape[1]), pad1_ref.dtype)
    zero2 = jnp.zeros((1, pad2_ref.shape[1]), pad2_ref.dtype)
    pad1_ref[0:1, :] = zero1
    pad1_ref[Hh + 1:Hh + 2, :] = zero1
    pad2_ref[0:1, :] = zero2
    pad2_ref[Hh + 1:Hh + 2, :] = zero2

    # MaxPool2d(2): window members pre-gathered on a leading axis -> 3 VPU
    # maximums, no cross-sublane reduction.
    xw = x_ref[0]                                  # (4, Hh, Wh*C_in) bf16
    pooled = jnp.maximum(jnp.maximum(xw[0], xw[1]),
                         jnp.maximum(xw[2], xw[3]))
    pad1_ref[1:1 + Hh, :] = pooled.astype(pad1_ref.dtype)

    def conv_bias_relu(pad_ref, w_ref, b_ref):
        nout = w_ref.shape[-1]
        acc = jnp.zeros((Hh, nout), jnp.float32)
        # 3x3 conv as 3 matmuls: height taps via contiguous row-shifted
        # slices of the padded scratch; width taps/channels/BN-scale already
        # folded into the block-Toeplitz weight.  bf16 operands, f32 acc.
        for dy in range(3):
            lhs = pad_ref[dy:dy + Hh, :].astype(jnp.bfloat16)
            acc = acc + jnp.dot(lhs, w_ref[dy],
                                preferred_element_type=jnp.float32)
        # folded BatchNorm bias + ReLU (f32 epilogue)
        return jnp.maximum(acc + b_ref[...], 0.0)

    h1 = conv_bias_relu(pad1_ref, w1_ref, b1_ref)
    # Feed conv2 directly: conv1's activations go straight into pad2's interior.
    pad2_ref[1:1 + Hh, :] = h1.astype(pad2_ref.dtype)
    h2 = conv_bias_relu(pad2_ref, w2_ref, b2_ref)
    o_ref[0] = h2.astype(o_ref.dtype)


def _fold_bn(w9, g, b, m, v):
    """Fold eval-mode BatchNorm into the conv: w' = w*scale, bias = b - m*scale."""
    scale = (g * jax.lax.rsqrt(v + EPS)).reshape(-1)           # (C_out,)
    return w9 * scale[None, None, :], b.reshape(-1) - m.reshape(-1) * scale


def _width_toeplitz(w9, Wh):
    """(9, C_in, C_out) HWIO taps -> (3, Wh*C_in, Wh*C_out) block-banded mats.

    Each matrix applies the three width taps + channel mixing of one height
    tap as a single matmul on a (Hh, Wh*C_in) lane-merged slab (width zero
    padding is implicit in the band structure).
    """
    # TODO(synk): weight is replicated Wh times; fine for modest Wh, switch to
    # an im2col formulation for very wide feature maps.
    _, cin, cout = w9.shape
    w = w9.reshape(3, 3, cin, cout)
    mats = []
    for dy in range(3):
        mat = jnp.zeros((Wh, cin, Wh, cout), w9.dtype)
        for dx in range(3):
            off = dx - 1                                       # w_in = w_out + off
            w_out = jnp.arange(max(0, -off), Wh - max(0, off))
            mat = mat.at[w_out + off, :, w_out, :].set(w[dy, dx])
        mats.append(mat.reshape(Wh * cin, Wh * cout))
    return jnp.stack(mats, axis=0)


def down_forward(x_nchw, params):
    """Pallas implementation of Down.forward.  Input/output are NCHW."""
    N, C_in, H, W = x_nchw.shape
    Hh, Wh = H // 2, W // 2
    C_mid = params["w1"].shape[-1]
    C_out = params["w2"].shape[-1]

    # glue: NCHW -> NHWC, crop to even H/W (MaxPool2d floors), gather the 2x2
    # window members onto a leading axis, merge (W, C) on the lane axis, bf16.
    x = jnp.transpose(x_nchw, (0, 2, 3, 1))[:, :2 * Hh, :2 * Wh, :]
    x_win = (x.reshape(N, Hh, 2, Wh, 2, C_in)
              .transpose(0, 2, 4, 1, 3, 5)
              .reshape(N, 4, Hh, Wh * C_in)
              .astype(jnp.bfloat16))

    # fold BN into the convs, then fold width taps/channels into the weights.
    w1s, bias1 = _fold_bn(params["w1"], params["g1"], params["b1"],
                          params["m1"], params["v1"])
    w2s, bias2 = _fold_bn(params["w2"], params["g2"], params["b2"],
                          params["m2"], params["v2"])
    w1_t = _width_toeplitz(w1s, Wh).astype(jnp.bfloat16)   # (3, Wh*C_in, Wh*C_mid)
    w2_t = _width_toeplitz(w2s, Wh).astype(jnp.bfloat16)   # (3, Wh*C_mid, Wh*C_out)
    b1_row = jnp.tile(bias1, Wh).reshape(1, Wh * C_mid).astype(jnp.float32)
    b2_row = jnp.tile(bias2, Wh).reshape(1, Wh * C_out).astype(jnp.float32)

    kernel = functools.partial(_down_kernel, Hh=Hh)

    out = pl.pallas_call(
        kernel,
        out_shape=jax.ShapeDtypeStruct((N, Hh, Wh * C_out), jnp.float32),
        grid=(N,),
        in_specs=[
            pl.BlockSpec((1, 4, Hh, Wh * C_in), lambda i: (i, 0, 0, 0)),
            pl.BlockSpec((3, Wh * C_in, Wh * C_mid), lambda i: (0, 0, 0)),
            pl.BlockSpec((1, Wh * C_mid), lambda i: (0, 0)),
            pl.BlockSpec((3, Wh * C_mid, Wh * C_out), lambda i: (0, 0, 0)),
            pl.BlockSpec((1, Wh * C_out), lambda i: (0, 0)),
        ],
        out_specs=pl.BlockSpec((1, Hh, Wh * C_out), lambda i: (i, 0, 0)),
        scratch_shapes=[
            pltpu.VMEM((Hh + 2, Wh * C_in), jnp.float32),
            pltpu.VMEM((Hh + 2, Wh * C_mid), jnp.float32),
        ],
        compiler_params=pltpu.CompilerParams(
            dimension_semantics=("parallel",),
            vmem_limit_bytes=32 * 1024 * 1024),
    )(x_win, w1_t, b1_row, w2_t, b2_row)

    # glue: (N, Hh, Wh*C_out) lane-dense output -> NCHW
    return jnp.transpose(out.reshape(N, Hh, Wh, C_out), (0, 3, 1, 2))


def ref_forward(x_nchw, params):
    """Pure-JAX f32 reference (same eval-mode BN semantics)."""
    x = jnp.transpose(x_nchw, (0, 2, 3, 1))
    x = jax.lax.reduce_window(x, -jnp.inf, jax.lax.max,
                              (1, 2, 2, 1), (1, 2, 2, 1), "VALID")

    def conv_bn_relu(x, w9, g, b, m, v):
        cin, cout = w9.shape[1], w9.shape[2]
        w = w9.reshape(3, 3, cin, cout)
        y = jax.lax.conv_general_dilated(
            x, w, (1, 1), "SAME",
            dimension_numbers=("NHWC", "HWIO", "NHWC"),
            precision=jax.lax.Precision.HIGHEST)
        g, b, m, v = (t.reshape(1, 1, 1, -1) for t in (g, b, m, v))
        y = (y - m) * (g * jax.lax.rsqrt(v + EPS)) + b
        return jnp.maximum(y, 0.0)

    x = conv_bn_relu(x, params["w1"], params["g1"], params["b1"],
                     params["m1"], params["v1"])
    x = conv_bn_relu(x, params["w2"], params["g2"], params["b2"],
                     params["m2"], params["v2"])
    return jnp.transpose(x, (0, 3, 1, 2))


def init_params(key, c_in, c_mid, c_out):
    ks = jax.random.split(key, 10)
    return {
        # conv weights stored as (9 taps, C_in, C_out) == HWIO flattened
        "w1": 0.1 * jax.random.normal(ks[0], (9, c_in, c_mid), jnp.float32),
        "g1": 1.0 + 0.1 * jax.random.normal(ks[1], (1, c_mid), jnp.float32),
        "b1": 0.1 * jax.random.normal(ks[2], (1, c_mid), jnp.float32),
        "m1": 0.1 * jax.random.normal(ks[3], (1, c_mid), jnp.float32),
        "v1": jax.random.uniform(ks[4], (1, c_mid), jnp.float32, 0.5, 1.5),
        "w2": 0.1 * jax.random.normal(ks[5], (9, c_mid, c_out), jnp.float32),
        "g2": 1.0 + 0.1 * jax.random.normal(ks[6], (1, c_out), jnp.float32),
        "b2": 0.1 * jax.random.normal(ks[7], (1, c_out), jnp.float32),
        "m2": 0.1 * jax.random.normal(ks[8], (1, c_out), jnp.float32),
        "v2": jax.random.uniform(ks[9], (1, c_out), jnp.float32, 0.5, 1.5),
    }


if __name__ == "__main__":
    key = jax.random.PRNGKey(0)
    kx, kp = jax.random.split(key)

    N, C_in, H, W = 2, 4, 16, 16
    C_out = 8                     # Down(in_channels=4, out_channels=8); mid == out
    x = jax.random.normal(kx, (N, C_in, H, W), jnp.float32)
    params = init_params(kp, C_in, C_out, C_out)

    out = jax.block_until_ready(down_forward(x, params))
    ref = jax.block_until_ready(ref_forward(x, params))

    assert out.shape == (N, C_out, H // 2, W // 2), out.shape
    # bf16 MXU operands (f32 accumulation) vs pure-f32 reference -> 3e-2 tol.
    np.testing.assert_allclose(np.asarray(out), np.asarray(ref),
                               rtol=3e-2, atol=3e-2)
    print("KERNEL_OK")
</pallas_src>

<mosaic_0001>
module attributes {stable_mosaic.version = 11 : i64} {
  func.func @_down_kernel(%arg0: i32, %arg1: memref<1x4x8x32xbf16, #tpu.memory_space<vmem>>, %arg2: memref<3x32x64xbf16, #tpu.memory_space<vmem>>, %arg3: memref<1x64xf32, #tpu.memory_space<vmem>>, %arg4: memref<3x64x64xbf16, #tpu.memory_space<vmem>>, %arg5: memref<1x64xf32, #tpu.memory_space<vmem>>, %arg6: memref<1x8x64xf32, #tpu.memory_space<vmem>>, %arg7: memref<10x32xf32, #tpu.memory_space<vmem>>, %arg8: memref<10x64xf32, #tpu.memory_space<vmem>>) attributes {dimension_semantics = [#tpu.dimension_semantics<parallel>], iteration_bounds = array<i64: 2>, scalar_prefetch = 0 : i64, scratch_operands = 2 : i64, tpu.core_type = #tpu.core_type<tc>, window_params = [{transform_indices = @transform_0, window_bounds = array<i64: 1, 4, 8, 32>}, {pipeline_mode = #tpu.pipeline_mode<synchronous>, transform_indices = @transform_1, window_bounds = array<i64: 3, 32, 64>}, {pipeline_mode = #tpu.pipeline_mode<synchronous>, transform_indices = @transform_2, window_bounds = array<i64: 1, 64>}, {pipeline_mode = #tpu.pipeline_mode<synchronous>, transform_indices = @transform_3, window_bounds = array<i64: 3, 64, 64>}, {pipeline_mode = #tpu.pipeline_mode<synchronous>, transform_indices = @transform_4, window_bounds = array<i64: 1, 64>}, {transform_indices = @transform_5, window_bounds = array<i64: 1, 8, 64>}]} {
    %cst = arith.constant 0.000000e+00 : f32
    %0 = vector.broadcast %cst : f32 to vector<1x32xf32>
    %cst_0 = arith.constant 0.000000e+00 : f32
    %1 = vector.broadcast %cst_0 : f32 to vector<1x64xf32>
    %c0 = arith.constant 0 : index
    %c0_1 = arith.constant 0 : index
    %2 = vector.load %arg7[%c0, %c0_1] : memref<10x32xf32, #tpu.memory_space<vmem>>, vector<1x32xf32>
    tpu.vector_store %arg7[%c0, %c0_1], %0 {strides = array<i32>} : memref<10x32xf32, #tpu.memory_space<vmem>>, vector<1x32xf32>,
    %c9 = arith.constant 9 : index
    %c0_2 = arith.constant 0 : index
    %3 = vector.load %arg7[%c9, %c0_2] : memref<10x32xf32, #tpu.memory_space<vmem>>, vector<1x32xf32>
    tpu.vector_store %arg7[%c9, %c0_2], %0 {strides = array<i32>} : memref<10x32xf32, #tpu.memory_space<vmem>>, vector<1x32xf32>,
    %c0_3 = arith.constant 0 : index
    %c0_4 = arith.constant 0 : index
    %4 = vector.load %arg8[%c0_3, %c0_4] : memref<10x64xf32, #tpu.memory_space<vmem>>, vector<1x64xf32>
    tpu.vector_store %arg8[%c0_3, %c0_4], %1 {strides = array<i32>} : memref<10x64xf32, #tpu.memory_space<vmem>>, vector<1x64xf32>,
    %c9_5 = arith.constant 9 : index
    %c0_6 = arith.constant 0 : index
    %5 = vector.load %arg8[%c9_5, %c0_6] : memref<10x64xf32, #tpu.memory_space<vmem>>, vector<1x64xf32>
    tpu.vector_store %arg8[%c9_5, %c0_6], %1 {strides = array<i32>} : memref<10x64xf32, #tpu.memory_space<vmem>>, vector<1x64xf32>,
    %c0_7 = arith.constant 0 : index
    %c0_8 = arith.constant 0 : index
    %c0_9 = arith.constant 0 : index
    %c0_10 = arith.constant 0 : index
    %6 = vector.load %arg1[%c0_7, %c0_8, %c0_9, %c0_10] : memref<1x4x8x32xbf16, #tpu.memory_space<vmem>>, vector<1x4x8x32xbf16>
    %7 = vector.shape_cast %6 : vector<1x4x8x32xbf16> to vector<4x8x32xbf16>
    %8 = vector.extract_strided_slice %7 {offsets = [0, 0, 0], sizes = [1, 8, 32], strides = [1, 1, 1]} : vector<4x8x32xbf16> to vector<1x8x32xbf16>
    %9 = vector.shape_cast %8 : vector<1x8x32xbf16> to vector<8x32xbf16>
    %10 = vector.extract_strided_slice %7 {offsets = [1, 0, 0], sizes = [1, 8, 32], strides = [1, 1, 1]} : vector<4x8x32xbf16> to vector<1x8x32xbf16>
    %11 = vector.shape_cast %10 : vector<1x8x32xbf16> to vector<8x32xbf16>
    %12 = arith.maximumf %9, %11 : vector<8x32xbf16>
    %13 = vector.extract_strided_slice %7 {offsets = [2, 0, 0], sizes = [1, 8, 32], strides = [1, 1, 1]} : vector<4x8x32xbf16> to vector<1x8x32xbf16>
    %14 = vector.shape_cast %13 : vector<1x8x32xbf16> to vector<8x32xbf16>
    %15 = vector.extract_strided_slice %7 {offsets = [3, 0, 0], sizes = [1, 8, 32], strides = [1, 1, 1]} : vector<4x8x32xbf16> to vector<1x8x32xbf16>
    %16 = vector.shape_cast %15 : vector<1x8x32xbf16> to vector<8x32xbf16>
    %17 = arith.maximumf %14, %16 : vector<8x32xbf16>
    %18 = arith.maximumf %12, %17 : vector<8x32xbf16>
    %19 = arith.extf %18 : vector<8x32xbf16> to vector<8x32xf32>
    %c1 = arith.constant 1 : index
    %c0_11 = arith.constant 0 : index
    %20 = vector.load %arg7[%c1, %c0_11] : memref<10x32xf32, #tpu.memory_space<vmem>>, vector<8x32xf32>
    tpu.vector_store %arg7[%c1, %c0_11], %19 {strides = array<i32>} : memref<10x32xf32, #tpu.memory_space<vmem>>, vector<8x32xf32>,
    %cst_12 = arith.constant 0.000000e+00 : f32
    %21 = vector.broadcast %cst_12 : f32 to vector<8x64xf32>
    %c0_13 = arith.constant 0 : index
    %c0_14 = arith.constant 0 : index
    %22 = vector.load %arg7[%c0_13, %c0_14] : memref<10x32xf32, #tpu.memory_space<vmem>>, vector<8x32xf32>
    %23 = arith.truncf %22 : vector<8x32xf32> to vector<8x32xbf16>
    %c0_15 = arith.constant 0 : index
    %c0_16 = arith.constant 0 : index
    %c0_17 = arith.constant 0 : index
    %24 = vector.load %arg2[%c0_15, %c0_16, %c0_17] : memref<3x32x64xbf16, #tpu.memory_space<vmem>>, vector<1x32x64xbf16>
    %25 = vector.shape_cast %24 : vector<1x32x64xbf16> to vector<32x64xbf16>
    %cst_18 = arith.constant dense<0.000000e+00> : vector<8x64xf32>
    %26 = tpu.matmul %23, %25, %cst_18 {dimension_numbers = #tpu.dot_dimension_numbers<[1], [0], [0], [1], [0, 0, 1, 1], [], []>} : vector<8x32xbf16>, vector<32x64xbf16>, vector<8x64xf32> -> vector<8x64xf32>
    %27 = arith.addf %21, %26 : vector<8x64xf32>
    %c1_19 = arith.constant 1 : index
    %c0_20 = arith.constant 0 : index
    %28 = vector.load %arg7[%c1_19, %c0_20] : memref<10x32xf32, #tpu.memory_space<vmem>>, vector<8x32xf32>
    %29 = arith.truncf %28 : vector<8x32xf32> to vector<8x32xbf16>
    %c1_21 = arith.constant 1 : index
    %c0_22 = arith.constant 0 : index
    %c0_23 = arith.constant 0 : index
    %30 = vector.load %arg2[%c1_21, %c0_22, %c0_23] : memref<3x32x64xbf16, #tpu.memory_space<vmem>>, vector<1x32x64xbf16>
    %31 = vector.shape_cast %30 : vector<1x32x64xbf16> to vector<32x64xbf16>
    %cst_24 = arith.constant dense<0.000000e+00> : vector<8x64xf32>
    %32 = tpu.matmul %29, %31, %cst_24 {dimension_numbers = #tpu.dot_dimension_numbers<[1], [0], [0], [1], [0, 0, 1, 1], [], []>} : vector<8x32xbf16>, vector<32x64xbf16>, vector<8x64xf32> -> vector<8x64xf32>
    %33 = arith.addf %27, %32 : vector<8x64xf32>
    %c2 = arith.constant 2 : index
    %c0_25 = arith.constant 0 : index
    %34 = vector.load %arg7[%c2, %c0_25] : memref<10x32xf32, #tpu.memory_space<vmem>>, vector<8x32xf32>
    %35 = arith.truncf %34 : vector<8x32xf32> to vector<8x32xbf16>
    %c2_26 = arith.constant 2 : index
    %c0_27 = arith.constant 0 : index
    %c0_28 = arith.constant 0 : index
    %36 = vector.load %arg2[%c2_26, %c0_27, %c0_28] : memref<3x32x64xbf16, #tpu.memory_space<vmem>>, vector<1x32x64xbf16>
    %37 = vector.shape_cast %36 : vector<1x32x64xbf16> to vector<32x64xbf16>
    %cst_29 = arith.constant dense<0.000000e+00> : vector<8x64xf32>
    %38 = tpu.matmul %35, %37, %cst_29 {dimension_numbers = #tpu.dot_dimension_numbers<[1], [0], [0], [1], [0, 0, 1, 1], [], []>} : vector<8x32xbf16>, vector<32x64xbf16>, vector<8x64xf32> -> vector<8x64xf32>
    %39 = arith.addf %33, %38 : vector<8x64xf32>
    %c0_30 = arith.constant 0 : index
    %c0_31 = arith.constant 0 : index
    %40 = vector.load %arg3[%c0_30, %c0_31] : memref<1x64xf32, #tpu.memory_space<vmem>>, vector<1x64xf32>
    %41 = vector.broadcast %40 : vector<1x64xf32> to vector<8x64xf32>
    %42 = arith.addf %39, %41 : vector<8x64xf32>
    %cst_32 = arith.constant 0.000000e+00 : f32
    %43 = vector.broadcast %cst_32 : f32 to vector<8x64xf32>
    %44 = arith.maximumf %42, %43 : vector<8x64xf32>
    %c1_33 = arith.constant 1 : index
    %c0_34 = arith.constant 0 : index
    %45 = vector.load %arg8[%c1_33, %c0_34] : memref<10x64xf32, #tpu.memory_space<vmem>>, vector<8x64xf32>
    tpu.vector_store %arg8[%c1_33, %c0_34], %44 {strides = array<i32>} : memref<10x64xf32, #tpu.memory_space<vmem>>, vector<8x64xf32>,
    %cst_35 = arith.constant 0.000000e+00 : f32
    %46 = vector.broadcast %cst_35 : f32 to vector<8x64xf32>
    %c0_36 = arith.constant 0 : index
    %c0_37 = arith.constant 0 : index
    %47 = vector.load %arg8[%c0_36, %c0_37] : memref<10x64xf32, #tpu.memory_space<vmem>>, vector<8x64xf32>
    %48 = arith.truncf %47 : vector<8x64xf32> to vector<8x64xbf16>
    %c0_38 = arith.constant 0 : index
    %c0_39 = arith.constant 0 : index
    %c0_40 = arith.constant 0 : index
    %49 = vector.load %arg4[%c0_38, %c0_39, %c0_40] : memref<3x64x64xbf16, #tpu.memory_space<vmem>>, vector<1x64x64xbf16>
    %50 = vector.shape_cast %49 : vector<1x64x64xbf16> to vector<64x64xbf16>
    %cst_41 = arith.constant dense<0.000000e+00> : vector<8x64xf32>
    %51 = tpu.matmul %48, %50, %cst_41 {dimension_numbers = #tpu.dot_dimension_numbers<[1], [0], [0], [1], [0, 0, 1, 1], [], []>} : vector<8x64xbf16>, vector<64x64xbf16>, vector<8x64xf32> -> vector<8x64xf32>
    %52 = arith.addf %46, %51 : vector<8x64xf32>
    %c1_42 = arith.constant 1 : index
    %c0_43 = arith.constant 0 : index
    %53 = vector.load %arg8[%c1_42, %c0_43] : memref<10x64xf32, #tpu.memory_space<vmem>>, vector<8x64xf32>
    %54 = arith.truncf %53 : vector<8x64xf32> to vector<8x64xbf16>
    %c1_44 = arith.constant 1 : index
    %c0_45 = arith.constant 0 : index
    %c0_46 = arith.constant 0 : index
    %55 = vector.load %arg4[%c1_44, %c0_45, %c0_46] : memref<3x64x64xbf16, #tpu.memory_space<vmem>>, vector<1x64x64xbf16>
    %56 = vector.shape_cast %55 : vector<1x64x64xbf16> to vector<64x64xbf16>
    %cst_47 = arith.constant dense<0.000000e+00> : vector<8x64xf32>
    %57 = tpu.matmul %54, %56, %cst_47 {dimension_numbers = #tpu.dot_dimension_numbers<[1], [0], [0], [1], [0, 0, 1, 1], [], []>} : vector<8x64xbf16>, vector<64x64xbf16>, vector<8x64xf32> -> vector<8x64xf32>
    %58 = arith.addf %52, %57 : vector<8x64xf32>
    %c2_48 = arith.constant 2 : index
    %c0_49 = arith.constant 0 : index
    %59 = vector.load %arg8[%c2_48, %c0_49] : memref<10x64xf32, #tpu.memory_space<vmem>>, vector<8x64xf32>
    %60 = arith.truncf %59 : vector<8x64xf32> to vector<8x64xbf16>
    %c2_50 = arith.constant 2 : index
    %c0_51 = arith.constant 0 : index
    %c0_52 = arith.constant 0 : index
    %61 = vector.load %arg4[%c2_50, %c0_51, %c0_52] : memref<3x64x64xbf16, #tpu.memory_space<vmem>>, vector<1x64x64xbf16>
    %62 = vector.shape_cast %61 : vector<1x64x64xbf16> to vector<64x64xbf16>
    %cst_53 = arith.constant dense<0.000000e+00> : vector<8x64xf32>
    %63 = tpu.matmul %60, %62, %cst_53 {dimension_numbers = #tpu.dot_dimension_numbers<[1], [0], [0], [1], [0, 0, 1, 1], [], []>} : vector<8x64xbf16>, vector<64x64xbf16>, vector<8x64xf32> -> vector<8x64xf32>
    %64 = arith.addf %58, %63 : vector<8x64xf32>
    %c0_54 = arith.constant 0 : index
    %c0_55 = arith.constant 0 : index
    %65 = vector.load %arg5[%c0_54, %c0_55] : memref<1x64xf32, #tpu.memory_space<vmem>>, vector<1x64xf32>
    %66 = vector.broadcast %65 : vector<1x64xf32> to vector<8x64xf32>
    %67 = arith.addf %64, %66 : vector<8x64xf32>
    %cst_56 = arith.constant 0.000000e+00 : f32
    %68 = vector.broadcast %cst_56 : f32 to vector<8x64xf32>
    %69 = arith.maximumf %67, %68 : vector<8x64xf32>
    %c0_57 = arith.constant 0 : index
    %c0_58 = arith.constant 0 : index
    %c0_59 = arith.constant 0 : index
    %70 = vector.load %arg6[%c0_57, %c0_58, %c0_59] : memref<1x8x64xf32, #tpu.memory_space<vmem>>, vector<1x8x64xf32>
    %71 = vector.shape_cast %70 : vector<1x8x64xf32> to vector<8x64xf32>
    %72 = vector.shape_cast %69 : vector<8x64xf32> to vector<1x8x64xf32>
    tpu.vector_store %arg6[%c0_57, %c0_58, %c0_59], %72 {strides = array<i32>} : memref<1x8x64xf32, #tpu.memory_space<vmem>>, vector<1x8x64xf32>,
    return
  }
  func.func @transform_0(%arg0: i32) -> (i32, i32, i32, i32) {
    %c0_i32 = arith.constant 0 : i32
    %c0_i32_0 = arith.constant 0 : i32
    %c0_i32_1 = arith.constant 0 : i32
    %c0_i32_2 = arith.constant 0 : i32
    return %arg0, %c0_i32, %c0_i32_0, %c0_i32_1 : i32, i32, i32, i32
  }
  func.func @transform_1(%arg0: i32) -> (i32, i32, i32) {
    %c0_i32 = arith.constant 0 : i32
    %c0_i32_0 = arith.constant 0 : i32
    %c0_i32_1 = arith.constant 0 : i32
    %c0_i32_2 = arith.constant 0 : i32
    return %c0_i32, %c0_i32_0, %c0_i32_1 : i32, i32, i32
  }
  func.func @transform_2(%arg0: i32) -> (i32, i32) {
    %c0_i32 = arith.constant 0 : i32
    %c0_i32_0 = arith.constant 0 : i32
    %c0_i32_1 = arith.constant 0 : i32
    return %c0_i32, %c0_i32_0 : i32, i32
  }
  func.func @transform_3(%arg0: i32) -> (i32, i32, i32) {
    %c0_i32 = arith.constant 0 : i32
    %c0_i32_0 = arith.constant 0 : i32
    %c0_i32_1 = arith.constant 0 : i32
    %c0_i32_2 = arith.constant 0 : i32
    return %c0_i32, %c0_i32_0, %c0_i32_1 : i32, i32, i32
  }
  func.func @transform_4(%arg0: i32) -> (i32, i32) {
    %c0_i32 = arith.constant 0 : i32
    %c0_i32_0 = arith.constant 0 : i32
    %c0_i32_1 = arith.constant 0 : i32
    return %c0_i32, %c0_i32_0 : i32, i32
  }
  func.func @transform_5(%arg0: i32) -> (i32, i32, i32) {
    %c0_i32 = arith.constant 0 : i32
    %c0_i32_0 = arith.constant 0 : i32
    %c0_i32_1 = arith.constant 0 : i32
    return %arg0, %c0_i32, %c0_i32_0 : i32, i32, i32
  }
}

</mosaic_0001>

<bundles_post_ra>
// kernel: tpu_custom_call.1
= control target key start
LH: loop header
LB: loop body
LE: loop exit
PB: predicated region body
PF: predicated region fallthrough
CT: control target
= control target key end

     0   :  { %10 = vsyncpa [#allocation5], 0  ;;  %s1537_s0 = inlined_call_operand.hbm [shape: bf16[2,4,8,32], index: 0, kind: input, shape index: {}]   ;;  %s1538_s1 = inlined_call_operand.hbm [shape: bf16[3,32,64], index: 1, kind: input, shape index: {}]   ;;  %s1539_s2 = inlined_call_operand.vmem [shape: f32[1,64], index: 2, kind: input, shape index: {}]   ;;  %s1540_s3 = inlined_call_operand.hbm [shape: bf16[3,64,64], index: 3, kind: input, shape index: {}]   ;;  %s1541_s4 = inlined_call_operand.vmem [shape: f32[1,64], index: 4, kind: input, shape index: {}]   ;;  %s1542_s5 = inlined_call_operand.hbm [shape: f32[2,8,64], index: 5, kind: output, shape index: {}]  }
   0x1   :  { %12 = vsyncpa [#allocation5 + $0x1], 0 }
   0x2   :  { %13 = vsyncpa [#allocation8], 0 }
   0x3   :  { %14 = vsyncpa [#allocation6], 0 }
   0x4   :  { %16 = vsyncpa [#allocation6 + $0x1], 0  ;;  %s1246_s18 = smov 0   ;;  %s1248_s19 = smov 0  }
   0x5   :  { %s1250_s20 = smov 0   ;;  %s1252_s21 = smov 0  }
   0x6 LB: > { %s1267_s22 = sadd.s32 4294967295, %s1206_s21   ;;  %s833_s23 = sadd.s32 4294967294, %s1206_s21   ;;  %s1206_s21 = sphi %s1252_s21, %s1562_s21   ;;  %s1202_s20 = sphi %s1250_s20, %s1561_s20   ;;  %s1198_s19 = sphi %s1248_s19, %s1560_s19   ;;  %s1194_s18 = sphi %s1246_s18, %s1559_s18  }
   0x7   : > { %p42_p0 = scmp.ne.s32.totalorder %s1198_s19, %s1194_s18  ;;  %p1543_p1 = scmp.eq.s32.totalorder %s1267_s22, 0 }
   0x8   : > { %p156_p3 = scmp.eq.s32.totalorder %s833_s23, 1  ;;  %p834_p5 = scmp.ge.s32.totalorder %s1206_s21, 1 }
   0x9   : > { %p1276_p4 = por %p1543_p1, %p42_p0  ;;  %p163_p7 = scmp.lt.s32.totalorder %s1206_s21, 3 }
   0xa   : > { %p1281_p6 = por %p156_p3, %p42_p0  ;;  %s1208_s27 = smov [#allocation7]  }
   0xb   : > { %s1546_s24 = scalar_select %p1276_p4, 1, 0 }
   0xc   : > { %s1547_s25 = scalar_select %p1281_p6, 1, 0 }
   0xd   : > { %p1286_p8 = pnand %p834_p5, %p163_p7  ;;  %s175_s28 = sshll.u32 %s1208_s27, 4  ;;  %s1290_s28 = int_to_ptr.vmem [resolvable:$true] %s175_s28 }
   0xe   : > { %s1209_s30 = smov [#allocation9]   ;;  %s1050_s9 = scalar_lea.hbm %s1538_s1, 768 }
   0xf   : > { %p973_p9 = pneg %p1286_p8  ;;  %s191_s6 = sshll.u32 %s1209_s30, 4  ;;  %s1301_s6 = int_to_ptr.vmem [resolvable:$true] %s191_s6 }
  0x10   : > { %p1051_p12 = scmp.ne.s32.totalorder %s1538_s1, %s1050_s9  ;;  %p1057_p5 = scmp.lt.u32.totalorder %s1050_s9, %s1538_s1 }
  0x11   : > { %p1297_p11 = pnand %p973_p9, %p1543_p1 }
  0x13   : > { %p1052_p13 = pneg %p1297_p11 }
  0x15   : > { %p1053_p0 = pnand %p1052_p13, %p1051_p12 }
  0x17   : > { %p1054_p3 = pneg %p1053_p0 }
  0x19   : > { %p1059_p7 = pnand %p1057_p5, %p1054_p3 }
  0x1b   : > { %1062 = shalt.err (!%p1059_p7)
}
  0x1c   : > { %s1063_s14 = scalar_lea.vmem %s1290_s28, 768  ;;  %p1071_p2 = scmp.lt.s32.totalorder %s1290_s28, %s1290_s28 }
  0x1d   : > { %p1064_p9 = scmp.ne.s32.totalorder %s1290_s28, %s1063_s14  ;;  %p1072_p12 = scmp.lt.s32.totalorder %s1063_s14, %s1063_s14 }
  0x1f   : > { %p1066_p10 = pnand %p1064_p9, %p1052_p13  ;;  %p1073_p0 = por %p1072_p12, %p1071_p2 }
  0x21   : > { %p1067_p1 = pneg %p1066_p10 }
  0x23   : > { %p1074_p6 = pnand %p1073_p0, %p1067_p1 }
  0x25   : > { %1077 = shalt.err (!%p1074_p6)
}
  0x26   : > { %s1210_s15 = smov 64   ;;  %s1211_s16 = smov 4  }
  0x27   : > { %976 = dma.hbm_to_vmem [thread:$0]  (!%p1297_p11), %s1538_s1, 768, %s1290_s28, [#allocation8], %s1210_s15, %s1210_s15, %s1211_s16  }
  0x28   : > { %s1078_s7 = scalar_lea.hbm %s1540_s3, 1536 }
  0x29   : > { %p1079_p1 = scmp.ne.s32.totalorder %s1540_s3, %s1078_s7  ;;  %p1085_p10 = scmp.lt.u32.totalorder %s1078_s7, %s1540_s3 }
  0x2b   : > { %p1081_p2 = pnand %p1079_p1, %p1052_p13 }
  0x2d   : > { %p1082_p6 = pneg %p1081_p2 }
  0x2f   : > { %p1087_p3 = pnand %p1085_p10, %p1082_p6 }
  0x31   : > { %1090 = shalt.err (!%p1087_p3)
}
  0x32   : > { %s1091_s28 = scalar_lea.vmem %s1301_s6, 1536  ;;  %p1099_p12 = scmp.lt.s32.totalorder %s1301_s6, %s1301_s6 }
  0x33   : > { %p1092_p5 = scmp.ne.s32.totalorder %s1301_s6, %s1091_s28  ;;  %p1100_p0 = scmp.lt.s32.totalorder %s1091_s28, %s1091_s28 }
  0x35   : > { %p1094_p7 = pnand %p1092_p5, %p1052_p13  ;;  %p1101_p1 = por %p1100_p0, %p1099_p12 }
  0x37   : > { %p1095_p9 = pneg %p1094_p7 }
  0x39   : > { %p1102_p2 = pnand %p1101_p1, %p1095_p9 }
  0x3b   : > { %1105 = shalt.err (!%p1102_p2)
}
  0x3c   : > { %979 = dma.hbm_to_vmem [thread:$0]  (!%p1297_p11), %s1540_s3, 1536, %s1301_s6, [#allocation8], %s1210_s15, %s1210_s15, %s1211_s16  }
  0x3d   : > { %s1362_s29 = sadd.s32 1, %s1206_s21   ;;  %s29_s14 = sadd.s32 1, %s1202_s20 }
  0x3e   : > { %s26_s17 = ssub.s32 %s1206_s21, %s1362_s29  ;;  %p36_p13 = scmp.ne.s32.totalorder %s1202_s20, %s1198_s19 }
  0x3f   : > { %p27_p6 = scmp.eq.s32.totalorder %s26_s17, 0  ;;  %p37_p10 = scmp.eq.s32.totalorder %s1206_s21, 0 }
  0x40   : > { %p1550_p3 = scmp.eq.s32.totalorder %s1267_s22, 1  ;;  %p990_p7 = scmp.lt.s32.totalorder %s1206_s21, 2 }
  0x41   : > { %s1378_s27 = scalar_select %p27_p6, %s1202_s20, %s29_s14  }
  0x42   : > { %p1372_p5 = por %p1550_p3, %p36_p13  ;;  %p38_p9 = por %p37_p10, %p36_p13 }
  0x43   : > { %s208_s30 = sand.u32 1, %s1202_s20   ;;  %s876_s6 = sshll.u32 %s1206_s21, 8 }
  0x44   : > { %s1551_s23 = scalar_select %p1372_p5, 1, 0 }
  0x45   : > { %s838_s7 = sshll.u32 %s208_s30, 4  ;;  %s1385_s10 = scalar_lea.hbm %s1537_s0, %s876_s6 }
  0x46   : > { %s212_s11 = scalar_lea.vmem [#allocation4], %s838_s7  ;;  %p1389_p11 = pnand %p990_p7, %p38_p9 }
  0x47   : > { %s219_s28 = sshll.u32 %s212_s11, 4  ;;  %s1393_s13 = scalar_lea.sflag [#allocation5], %s208_s30  ;;  %s1387_s28 = int_to_ptr.vmem [resolvable:$true] %s219_s28 }
  0x48   : > { %s1106_s14 = scalar_lea.hbm %s1385_s10, 256  ;;  %p1108_p0 = pneg %p1389_p11 }
  0x49   : > { %p1107_p12 = scmp.ne.s32.totalorder %s1385_s10, %s1106_s14  ;;  %s1111_s6 = scalar_lea.hbm %s1537_s0, 512 }
  0x4a   : > { %p1112_p13 = scmp.lt.u32.totalorder %s1385_s10, %s1537_s0  ;;  %p1113_p6 = scmp.lt.u32.totalorder %s1111_s6, %s1106_s14 }
  0x4b   : > { %p1109_p1 = pnand %p1108_p0, %p1107_p12  ;;  %p1115_p3 = scmp.lt.u32.totalorder %s1106_s14, %s1385_s10 }
  0x4c   : > { %p1114_p10 = por %p1113_p6, %p1112_p13 }
  0x4d   : > { %p1110_p2 = pneg %p1109_p1 }
  0x4e   : > { %p1116_p7 = por %p1115_p3, %p1114_p10 }
  0x50   : > { %p1117_p9 = pnand %p1116_p7, %p1110_p2 }
  0x52   : > { %1120 = shalt.err (!%p1117_p9)
}
  0x53   : > { %s1121_s30 = scalar_lea.vmem %s1387_s28, 256  ;;  %s1212_s11 = smov [#allocation4]  }
  0x54   : > { %p1122_p12 = scmp.ne.s32.totalorder %s1387_s28, %s1121_s30  ;;  %s1126_s17 = sshll.u32 %s1212_s11, 4  ;;  %s1127_s17 = int_to_ptr.vmem [resolvable:$false] %s1126_s17 }
  0x55   : > { %s1128_s7 = scalar_lea.vmem %s1127_s17, 512  ;;  %p1129_p4 = scmp.lt.s32.totalorder %s1387_s28, %s1127_s17 }
  0x56   : > { %p1124_p1 = pnand %p1122_p12, %p1108_p0  ;;  %p1130_p13 = scmp.lt.s32.totalorder %s1128_s7, %s1121_s30 }
  0x58   : > { %p1125_p5 = pneg %p1124_p1  ;;  %p1131_p6 = por %p1130_p13, %p1129_p4 }
  0x5a   : > { %p1132_p10 = pnand %p1131_p6, %p1125_p5 }
  0x5c   : > { %1135 = shalt.err (!%p1132_p10)
}
  0x5d   : > { %983 = dma.hbm_to_vmem [thread:$0]  (!%p1389_p11), %s1385_s10, 256, %s1387_s28, %s1393_s13, %s1210_s15, %s1210_s15, %s1211_s16  }
  0x5e   : > { %231 = sbr.rel (%p1286_p8) target bundleno = 609 (0x261), region = 40  ;;  %s1427_s14 = sand.u32 (!%p1286_p8), 1, %s1198_s19  }
  0x5f   : > { %s842_s6 = sshll.u32 (!%p1286_p8), %s1427_s14, 4  ;;  %s234_s8 = scalar_lea.sflag (!%p1286_p8), [#allocation5], %s1427_s14 }
  0x60   : > { %s237_s9 = scalar_lea.vmem (!%p1286_p8), [#allocation4], %s842_s6  ;;  %p1553_p4 = scmp.ne.s32.totalorder (!%p1286_p8), %s1546_s24, 0 }
  0x65   : > { %1181 = dma.done.wait (%p1553_p4), %s234_s8, 256  }
  0x66   : > { %1183 = vsyncadd (%p1553_p4), %s234_s8, 4294967040  ;;  %p1554_p5 = scmp.eq.s32.totalorder %s1267_s22, 0 }
  0x68   : > { %1185 = dma.done.wait (%p1554_p5), [#allocation8], 2304   ;;  %p1555_p11 = pmov %p1554_p5 }
  0x69   : > { %vm273_vm0 = vcmask 253952   ;;  %v1213_v0 = vmov 0.0   ;;  %vm1214_vm1 = vmmov 0   ;;  %v1032_v1 = vld [vmem:[#allocation7 + $0x10] sm:$0xff]   ;;  %v1033_v2 = vld [vmem:[#allocation7] sm:$0xff]   ;;  %v1034_v3 = vld [vmem:[#allocation7 + $0x18] sm:$0xff]  }
  0x6a   : > { %1187 = vsyncadd (%p1555_p11), [#allocation8], 4294964992  ;;  %901 = vmatprep.subr.bf16.mxu0 %v1213_v0  ;;  %909 = vmatprep.subr.bf16.mxu1 %v1213_v0  ;;  %274 = vst.msk [vmem:[#allocation2] sm:$0x1] %vm273_vm0, %v1213_v0  ;;  %v1035_v4 = vld [vmem:[#allocation7 + $0x8] sm:$0xff]   ;;  %vm287_vm2 = vcmask 261120  }
  0x6b   : > { %275 = vst.msk [vmem:[#allocation2 + $0x9] sm:$0x1] %vm273_vm0, %v1213_v0  ;;  %905 = vmatprep.mubr.msk.bf16.mxu0 %vm1214_vm1, %v1213_v0  ;;  %913 = vmatprep.mubr.msk.bf16.mxu1 %vm1214_vm1, %v1213_v0  ;;  %v279_v5 = vld [vmem:[%s237_s9] sm:$0xf]  ;;  %v280_v6 = vld [vmem:[%s237_s9 + $0x4] sm:$0xf] }
  0x6c   : > { %902 = vmatpush3.bf16.msra.mxu0 %v1032_v1  ;;  %910 = vmatpush3.bf16.msra.mxu1 %v1033_v2  ;;  %v281_v7 = vld [vmem:[%s237_s9 + $0x8] sm:$0xf]  ;;  %v282_v8 = vld [vmem:[%s237_s9 + $0xc] sm:$0xf]  ;;  %v283_v9 = vmax.bf16 %v280_v6, %v279_v5  ;;  %v1036_v15 = vld [vmem:[#allocation7 + $0x20] sm:$0xff]   ;;  %vm276_vm3 = vcmask 516096  }
  0x6d   : > { %903 = vmatprep.subr.bf16.mxu0 %v1213_v0  ;;  %911 = vmatprep.subr.bf16.mxu1 %v1213_v0  ;;  %v284_v10 = vmax.bf16 %v282_v8, %v281_v7  ;;  %v1037_v18 = vld [vmem:[#allocation7 + $0x28] sm:$0xff]   ;;  %v1038_v21 = vld [vmem:[#allocation9 + $0x20] sm:$0xff]   ;;  %v1040_v23 = vld [vmem:[#allocation9 + $0x28] sm:$0xff]   ;;  %277 = vst.msk [vmem:[#allocation3] sm:$0x1] %vm276_vm3, %v1213_v0  ;;  %vm484_vm4 = vcmask 523264  }
  0x6e   : > { %v1039_v22 = vld [vmem:[#allocation9] sm:$0xff]   ;;  %v1041_v24 = vld [vmem:[#allocation9 + $0x8] sm:$0xff]   ;;  %v1042_v25 = vld [vmem:[#allocation9 + $0x30] sm:$0xff]   ;;  %278 = vst.msk [vmem:[#allocation3 + $0x9] sm:$0x1] %vm276_vm3, %v1213_v0  ;;  %s845_s15 = sshll.u32 %s1427_s14, 3 }
  0x6f   : > { %v285_v11 = vmax.bf16 %v284_v10, %v283_v9  ;;  %v1043_v26 = vld [vmem:[#allocation9 + $0x10] sm:$0xff]   ;;  %v1044_v27 = vld [vmem:[#allocation9 + $0x38] sm:$0xff]   ;;  %v1046_v48 = vld [vmem:[#allocation9 + $0x40] sm:$0xff]   ;;  %s873_s28 = sshll.u32 %s1267_s22, 7  ;;  %s271_s12 = scalar_lea.vmem [#allocation10], %s845_s15 }
  0x70   : > { %904 = vmatpush3.bf16.msra.mxu0 %v1034_v3  ;;  %912 = vmatpush3.bf16.msra.mxu1 %v1035_v4  ;;  %v1045_v28 = vld [vmem:[#allocation9 + $0x18] sm:$0xff]   ;;  %v855_v39 = vld [vmem:[%s1539_s2] ss:$0 sm:$0xff]  ;;  %v1047_v51 = vld [vmem:[#allocation9 + $0x48] sm:$0xff]   ;;  %s744_s13 = sshll.u32 %s271_s12, 4  ;;  %s1492_s17 = scalar_lea.hbm %s1542_s5, %s873_s28  ;;  %s1494_s13 = int_to_ptr.vmem [resolvable:$true] %s744_s13 }
  0x71   : > { %917 = vmatprep.subr.bf16.mxu0 %v1213_v0  ;;  %925 = vmatprep.subr.bf16.mxu1 %v1213_v0  ;;  %v286_v12 = vunpack.c.l.bf16 %v285_v11  ;;  %v1048_v52 = vld [vmem:[#allocation9 + $0x50] sm:$0xff]   ;;  %v1049_v53 = vld [vmem:[#allocation9 + $0x58] sm:$0xff]   ;;  %s731_s7 = scalar_lea.sflag [#allocation6], %s1427_s14  ;;  %s1136_s6 = scalar_lea.vmem %s1494_s13, 128 }
  0x72   : > { %p1137_p8 = scmp.ne.s32.totalorder %s1494_s13, %s1136_s6  ;;  %p1556_p0 = scmp.ne.s32.totalorder %s1551_s23, 0 }
  0x73   : > { %288 = vst.msk [vmem:[#allocation2 + $0x1] sm:$0xff] %vm287_vm2, %v286_v12  ;;  %s1215_s22 = smov [#allocation10]  }
  0x74   : > { %p1138_p2 = pnand %p1137_p8, %p1556_p0  ;;  %s1140_s8 = sshll.u32 %s1215_s22, 4  ;;  %s1141_s8 = int_to_ptr.vmem [resolvable:$false] %s1140_s8 }
  0x75   : > { %s1142_s9 = scalar_lea.vmem %s1141_s8, 256  ;;  %p1143_p7 = scmp.lt.s32.totalorder %s1494_s13, %s1141_s8 }
  0x76   : > { %p1139_p3 = pneg %p1138_p2  ;;  %p1144_p9 = scmp.lt.s32.totalorder %s1142_s9, %s1136_s6 }
  0x78   : > { %p1145_p12 = por %p1144_p9, %p1143_p7 }
  0x7a   : > { %v295_v13 = vld [vmem:[#allocation2 + $0x1] sm:$0xff]  ;;  %p1146_p1 = pnand %p1145_p12, %p1139_p3 }
  0x7b   : > { %v289_v14 = vld [vmem:[#allocation2] sm:$0xff]  ;;  %v296_v16 = vpack.c.bf16 %v295_v13, %v295_v13 }
  0x7c   : > { %v290_v17 = vpack.c.bf16 %v289_v14, %v289_v14  ;;  %v412_v19 = vld [vmem:[#allocation2 + $0x2] sm:$0xff] }
  0x7d   : > { %906 = vmatmul.mubr.msk.bf16.vlgmr.msra.gmra.mrb[0].mxu0 %vm287_vm2, %v296_v16  ;;  %v413_v20 = vpack.c.bf16 %v412_v19, %v412_v19 }
  0x7e   : > { %914 = vmatmul.mubr.msk.bf16.vlgmr.msra.gmra.mrb[0].mxu1 %vm287_vm2, %v290_v17  ;;  %918 = vmatpush3.bf16.msra.mxu0 %v1036_v15 }
  0x7f   : > { %921 = vmatprep.mubr.msk.bf16.mxu0 %vm1214_vm1, %v1213_v0  ;;  %919 = vmatprep.subr.bf16.mxu0 %v1213_v0 }
  0x80   : > { %933 = vmatprep.mubr.msk.bf16.mxu1 %vm1214_vm1, %v1213_v0  ;;  %926 = vmatpush3.bf16.msra.mxu1 %v1038_v21 }
  0x81   : > { %927 = vmatprep.subr.bf16.mxu1 %v1213_v0 }
  0x82   : > { %920 = vmatpush3.bf16.msra.mxu0 %v1037_v18 }
  0x83   : > { %937 = vmatprep.subr.bf16.mxu0 %v1213_v0 }
  0x84   : > { %928 = vmatpush3.bf16.msra.mxu1 %v1040_v23 }
  0x85   : > { %922 = vmatmul.mubr.msk.bf16.vlgmr.msra.gmra.mrb[4].mxu0 %vm287_vm2, %v413_v20  ;;  %929 = vmatprep.subr.bf16.mxu1 %v1213_v0 }
  0x86   : > { %945 = vmatprep.mubr.msk.bf16.mxu0 %vm1214_vm1, %v1213_v0  ;;  %938 = vmatpush3.bf16.msra.mxu0 %v1039_v22 }
  0x87   : > { %939 = vmatprep.subr.bf16.mxu0 %v1213_v0 }
  0x88   : > { %930 = vmatpush3.bf16.msra.mxu1 %v1042_v25 }
  0x89   : > { %931 = vmatprep.subr.bf16.mxu1 %v1213_v0 }
  0x8a   : > { %940 = vmatpush3.bf16.msra.mxu0 %v1041_v24 }
  0x8b   : > { %941 = vmatprep.subr.bf16.mxu0 %v1213_v0 }
  0x8c   : > { %932 = vmatpush3.bf16.msra.mxu1 %v1044_v27 }
  0x8d   : > { %949 = vmatprep.subr.bf16.mxu1 %v1213_v0 }
  0x8e   : > { %942 = vmatpush3.bf16.msra.mxu0 %v1043_v26 }
  0x8f   : > { %943 = vmatprep.subr.bf16.mxu0 %v1213_v0 }
  0x92   : > { %944 = vmatpush3.bf16.msra.mxu0 %v1045_v28 }
 0x150   : > { %v351_v29 = vpop.f32.mrb[0].mxu0 }
 0x151   : > { %v406_v30 = vpop.f32.mrb[0].mxu1  ;;  %v907_v32 = vpop.f32.mrb[1].mxu0 }
 0x152   : > { %v407_v31 = vadd.f32 %v406_v30, %v351_v29  ;;  %v915_v33 = vpop.f32.mrb[1].mxu1  ;;  %v354_v34 = vpop.f32.mrb[2].mxu0 }
 0x153   : > { %v409_v35 = vpop.f32.mrb[2].mxu1  ;;  %v908_v36 = vpop.f32.mrb[3].mxu0 }
 0x154   : > { %v916_v37 = vpop.f32.mrb[3].mxu1 }
 0x158   : > { %v468_v38 = vpop.f32.mrb[4].mxu0 }
 0x159   : > { %v474_v40 = vadd.f32 %v468_v38, %v407_v31  ;;  %v923_v41 = vpop.f32.mrb[5].mxu0 }
 0x15a   : > { %v471_v42 = vpop.f32.mrb[6].mxu0 }
 0x15b   : > { %v482_v43 = vadd.f32 %v855_v39, %v474_v40  ;;  %v924_v44 = vpop.f32.mrb[7].mxu0 }
 0x15d   : > { %v483_v45 = vmax.f32 %v482_v43, 0.0 }
 0x15f   : > { %485 = vst.msk [vmem:[#allocation3 + $0x1] sm:$0xff] %vm484_vm4, %v483_v45 }
 0x166   : > { %v496_v46 = vld [vmem:[#allocation3 + $0x1] sm:$0xff] }
 0x167   : > { %v486_v47 = vld [vmem:[#allocation3] sm:$0xff]  ;;  %v497_v49 = vpack.c.bf16 %v496_v46, %v496_v46 }
 0x168   : > { %v487_v50 = vpack.c.bf16 %v486_v47, %v486_v47  ;;  %v641_v54 = vld [vmem:[#allocation3 + $0x2] sm:$0xff] }
 0x169   : > { %934 = vmatmul.mubr.msk.bf16.vlgmr.msra.gmra.mrb[4].mxu1 %vm484_vm4, %v497_v49  ;;  %v642_v55 = vpack.c.bf16 %v641_v54, %v641_v54 }
 0x16a   : > { %946 = vmatmul.mubr.msk.bf16.vlgmr.msra.gmra.mrb[8].mxu0 %vm484_vm4, %v487_v50  ;;  %950 = vmatpush3.bf16.msra.mxu1 %v1046_v48 }
 0x16b   : > { %957 = vmatprep.mubr.msk.bf16.mxu1 %vm1214_vm1, %v1213_v0  ;;  %951 = vmatprep.subr.bf16.mxu1 %v1213_v0 }
 0x16e   : > { %952 = vmatpush3.bf16.msra.mxu1 %v1047_v51 }
 0x16f   : > { %953 = vmatprep.subr.bf16.mxu1 %v1213_v0 }
 0x172   : > { %954 = vmatpush3.bf16.msra.mxu1 %v1048_v52 }
 0x173   : > { %955 = vmatprep.subr.bf16.mxu1 %v1213_v0  ;;  %v871_v0 = vld [vmem:[%s1541_s4] ss:$0 sm:$0xff] }
 0x176   : > { %956 = vmatpush3.bf16.msra.mxu1 %v1049_v53 }
 0x179   : > { %958 = vmatmul.mubr.msk.bf16.vlgmr.msra.gmra.mrb[8].mxu1 %vm484_vm4, %v642_v55 }
 0x23c   : > { %v568_v56 = vpop.f32.mrb[4].mxu1 }
 0x23d   : > { %v635_v57 = vpop.f32.mrb[8].mxu0  ;;  %v935_v59 = vpop.f32.mrb[5].mxu1 }
 0x23e   : > { %v636_v58 = vadd.f32 %v635_v57, %v568_v56  ;;  %v947_v60 = vpop.f32.mrb[9].mxu0  ;;  %v571_v61 = vpop.f32.mrb[6].mxu1 }
 0x23f   : > { %v638_v62 = vpop.f32.mrb[10].mxu0  ;;  %v936_v63 = vpop.f32.mrb[7].mxu1 }
 0x240   : > { %v948_v1 = vpop.f32.mrb[11].mxu0 }
 0x24c   : > { %v713_v2 = vpop.f32.mrb[8].mxu1 }
 0x24d   : > { %v719_v3 = vadd.f32 %v713_v2, %v636_v58  ;;  %v959_v4 = vpop.f32.mrb[9].mxu1 }
 0x24e   : > { %v716_v5 = vpop.f32.mrb[10].mxu1 }
 0x24f   : > { %v727_v6 = vadd.f32 %v871_v0, %v719_v3  ;;  %v960_v7 = vpop.f32.mrb[11].mxu1 }
 0x251   : > { %v728_v8 = vmax.f32 %v727_v6, 0.0 }
 0x253   : > { %729 = vst.msk [vmem:[%s271_s12] sm:$0xff] %vm484_vm4, %v728_v8 }
 0x254   : > { %1149 = shalt.err (!%p1146_p1)
}
 0x255   : > { %s1150_s14 = scalar_lea.hbm %s1492_s17, 128  ;;  %s1154_s15 = scalar_lea.hbm %s1542_s5, 256 }
 0x256   : > { %p1151_p13 = scmp.ne.s32.totalorder %s1492_s17, %s1150_s14  ;;  %p1155_p4 = scmp.lt.u32.totalorder %s1492_s17, %s1542_s5 }
 0x257   : > { %p1156_p5 = scmp.lt.u32.totalorder %s1154_s15, %s1150_s14  ;;  %p1158_p8 = scmp.lt.u32.totalorder %s1150_s14, %s1492_s17 }
 0x258   : > { %p1152_p6 = pnand %p1151_p13, %p1556_p0 }
 0x259   : > { %p1157_p11 = por %p1156_p5, %p1155_p4 }
 0x25a   : > { %p1153_p10 = pneg %p1152_p6 }
 0x25b   : > { %p1159_p2 = por %p1158_p8, %p1157_p11 }
 0x25d   : > { %p1160_p3 = pnand %p1159_p2, %p1153_p10 }
 0x25f   : > { %1163 = shalt.err (!%p1160_p3)
}
 0x260   : > { %971 = dma.vmem_to_hbm [thread:$0]  (%p1556_p0), %s1494_s13, 128, %s1492_s17, %s731_s7  }
 0x261 PF: > { %s756_s28 = sand.u32 1, %s1194_s18   ;;  %p1557_p7 = scmp.ne.s32.totalorder %s1547_s25, 0 }
 0x262   : > { %p1558_p9 = scmp.ge.s32.totalorder %s1206_s21, 2  ;;  %s757_s12 = scalar_lea.sflag [#allocation6], %s756_s28 }
 0x264   : > { %p985_p12 = pnand %p1558_p9, %p1557_p7 }
 0x266   : > { %1189 = dma.done.wait (!%p985_p12), %s757_s12, 128  }
 0x267   : > { %1191 = vsyncadd (!%p985_p12), %s757_s12, 4294967168  ;;  %p19_p1 = scmp.ge.s32.totalorder %s1362_s29, 4   ;;  %s1559_s18 = smov %s1198_s19 }
 0x268   : > { %s1560_s19 = smov %s1202_s20  ;;  %s1561_s20 = smov %s1378_s27 }
 0x269   : > { %s1562_s21 = smov %s1362_s29  ;;  %21 = sbr.rel (!%p19_p1) target bundleno = 6 (0x6), region = 97 }
 0x270   :  { %762 = vsyncpa [#allocation5], 1 }
 0x271   :  { %764 = vsyncpa [#allocation5 + $0x1], 1 }
 0x272   :  { %765 = vsyncpa [#allocation8], 1 }
 0x273   :  { %766 = vsyncpa [#allocation6], 1 }
 0x274   :  { %768 = vsyncpa [#allocation6 + $0x1], 1 }

</bundles_post_ra>
